<compile_context>
chip_gen: v5e
topology: v5e:2x2
jax: 0.10.0
libtpu: 0.0.40
codegen_flags: <defaults>
</compile_context>

<pallas_src>
import math
import functools

import jax
import jax.numpy as jnp
from jax.experimental import pallas as pl
from jax.experimental.pallas import tpu as pltpu


def _int_pow(x, n):
    """x**n for integer n >= 1 via exponentiation by squaring (VALU only)."""
    result = None
    base = x
    while True:
        if n & 1:
            result = base if result is None else result * base
        n >>= 1
        if n == 0:
            return result
        base = base * base


def _radial_bessel_cutoff_kernel(r_ref, w_ref, o_ref, *, rcut, p):
    # r_ref: (1, TN) float32 -- distances, lane-dense
    # w_ref: (B, 1)  float32 -- bessel weights (n * pi), trainable param
    # o_ref: (B, TN) float32 -- basis-major output (transposed in wrapper)
    r = r_ref[...]                                   # (1, TN)
    w = w_ref[...]                                   # (B, 1)

    inv_rcut = 1.0 / rcut
    x = r * inv_rcut                                 # (1, TN)

    # --- PolynomialCutoff (_poly_cutoff), narrow per-distance path ---
    p_int = int(p)
    if float(p_int) == float(p) and p_int >= 1:
        # integer exponent -> multiply chain, no exp/log on the EUP
        xp = _int_pow(x, p_int)                      # x^p
    else:
        # TODO(synk): non-integer p falls back to transcendental pow
        xp = x ** p
    xp1 = xp * x                                     # x^(p+1)
    xp2 = xp1 * x                                    # x^(p+2)
    cut = (1.0
           - (p + 1.0) * (p + 2.0) / 2.0 * xp
           + p * (p + 2.0) * xp1
           - p * (p + 1.0) / 2.0 * xp2)
    cut = jnp.where(x < 1.0, cut, 0.0)               # (1, TN)

    # --- fold prefactor * cutoff * (1/r) into one per-distance scale ---
    prefactor = 2.0 / rcut
    scale = (prefactor * cut) * pl.reciprocal(r)     # exact reciprocal, (1, TN)

    # --- wide path: one sin (EUP) + two muls on full 128-lane vregs ---
    o_ref[...] = jnp.sin(w * x) * scale              # (B, 1)x(1, TN) -> (B, TN)


def radial_bessel_with_polynomial_cutoff(r, bessel_weights, *, rcut=10.0,
                                         p=6.0, tile_n=None):
    """r: (N,) float32, bessel_weights: (B,) float32 -> (N, B) float32."""
    n = r.shape[0]
    b = bessel_weights.shape[0]

    if tile_n is None:
        # Big lane tiles to amortize ~0.35us/step pipeline overhead, but keep
        # >= 2 grid steps for small N so both v7x TensorCores are used.
        tile_n = min(32768, max(256, -(-n // 2)))
    tile_n = max(128, ((tile_n + 127) // 128) * 128)  # lane-aligned

    n_blocks = pl.cdiv(n, tile_n)
    n_pad = n_blocks * tile_n

    r32 = r.astype(jnp.float32)
    if n_pad != n:
        # pad with a benign value; padded outputs are sliced off below
        r32 = jnp.pad(r32, (0, n_pad - n), constant_values=1.0)
    r2d = r32.reshape(1, n_pad)                       # distances on lanes
    w2d = bessel_weights.astype(jnp.float32).reshape(b, 1)

    kernel = functools.partial(_radial_bessel_cutoff_kernel,
                               rcut=float(rcut), p=float(p))

    out_bn = pl.pallas_call(
        kernel,
        out_shape=jax.ShapeDtypeStruct((b, n_pad), jnp.float32),
        grid_spec=pltpu.PrefetchScalarGridSpec(
            num_scalar_prefetch=0,
            grid=(n_blocks,),
            in_specs=[
                pl.BlockSpec((1, tile_n), lambda i: (0, i)),
                pl.BlockSpec((b, 1), lambda i: (0, 0)),
            ],
            out_specs=pl.BlockSpec((b, tile_n), lambda i: (0, i)),
        ),
        compiler_params=pltpu.CompilerParams(
            dimension_semantics=("parallel",)),
    )(r2d, w2d)

    # Back to the module's (N, B) layout (cheap XLA transpose in the wrapper).
    return out_bn[:, :n].T


def reference_jax(r, bessel_weights, *, rcut=10.0, p=6.0):
    """Plain-JAX reference mirroring the PyTorch forward."""
    r = r.astype(jnp.float32)
    prefactor = 2.0 / rcut
    num = jnp.sin(bessel_weights[None, :] * r[:, None] / rcut)
    bessel = prefactor * num / r[:, None]
    x = r * (1.0 / rcut)
    cut = (1.0
           - (p + 1.0) * (p + 2.0) / 2.0 * x ** p
           + p * (p + 2.0) * x ** (p + 1.0)
           - p * (p + 1.0) / 2.0 * x ** (p + 2.0))
    cut = cut * (x < 1.0)
    return bessel * cut[:, None]


if __name__ == "__main__":
    rcut = 10.0
    number_of_basis = 8
    p = 6.0
    N = 1000  # deliberately not a multiple of the tile -> exercises padding

    # Deterministic "trainable" parameter init, exactly as in __init__:
    # torch.linspace(1, num_basis, num_basis) * pi
    bessel_weights = (jnp.linspace(1.0, number_of_basis, number_of_basis)
                      * math.pi).astype(jnp.float32)

    # Deterministic example input: distances strictly inside (0, rcut)
    key = jax.random.PRNGKey(0)
    r = jax.random.uniform(key, (N,), dtype=jnp.float32,
                           minval=0.1, maxval=rcut - 0.1)

    out = radial_bessel_with_polynomial_cutoff(r, bessel_weights,
                                               rcut=rcut, p=p)
    out = jax.block_until_ready(out)

    ref = reference_jax(r, bessel_weights, rcut=rcut, p=p)
    assert out.shape == (N, number_of_basis)
    assert jnp.allclose(out, ref, atol=2e-5, rtol=2e-5), "mismatch vs reference"

    print("KERNEL_OK")
</pallas_src>

<mosaic_0001>
module attributes {stable_mosaic.version = 11 : i64} {
  func.func @_radial_bessel_cutoff_kernel(%arg0: i32, %arg1: memref<1x512xf32, #tpu.memory_space<vmem>>, %arg2: memref<8x1xf32, #tpu.memory_space<vmem>>, %arg3: memref<8x512xf32, #tpu.memory_space<vmem>>) attributes {dimension_semantics = [#tpu.dimension_semantics<parallel>], iteration_bounds = array<i64: 2>, scalar_prefetch = 0 : i64, scratch_operands = 0 : i64, tpu.core_type = #tpu.core_type<tc>, window_params = [{transform_indices = @transform_0, window_bounds = array<i64: 1, 512>}, {pipeline_mode = #tpu.pipeline_mode<synchronous>, transform_indices = @transform_1, window_bounds = array<i64: 8, 1>}, {transform_indices = @transform_2, window_bounds = array<i64: 8, 512>}]} {
    %c0 = arith.constant 0 : index
    %c0_0 = arith.constant 0 : index
    %0 = vector.load %arg1[%c0, %c0_0] : memref<1x512xf32, #tpu.memory_space<vmem>>, vector<1x512xf32>
    %c0_1 = arith.constant 0 : index
    %c0_2 = arith.constant 0 : index
    %1 = vector.load %arg2[%c0_1, %c0_2] : memref<8x1xf32, #tpu.memory_space<vmem>>, vector<8x1xf32>
    %cst = arith.constant 1.000000e-01 : f32
    %2 = vector.broadcast %cst : f32 to vector<1x512xf32>
    %3 = arith.mulf %0, %2 : vector<1x512xf32>
    %4 = arith.mulf %3, %3 : vector<1x512xf32>
    %5 = arith.mulf %4, %4 : vector<1x512xf32>
    %6 = arith.mulf %4, %5 : vector<1x512xf32>
    %7 = arith.mulf %6, %3 : vector<1x512xf32>
    %8 = arith.mulf %7, %3 : vector<1x512xf32>
    %cst_3 = arith.constant 2.800000e+01 : f32
    %9 = vector.broadcast %cst_3 : f32 to vector<1x512xf32>
    %10 = arith.mulf %9, %6 : vector<1x512xf32>
    %cst_4 = arith.constant 1.000000e+00 : f32
    %11 = vector.broadcast %cst_4 : f32 to vector<1x512xf32>
    %12 = arith.subf %11, %10 : vector<1x512xf32>
    %cst_5 = arith.constant 4.800000e+01 : f32
    %13 = vector.broadcast %cst_5 : f32 to vector<1x512xf32>
    %14 = arith.mulf %13, %7 : vector<1x512xf32>
    %15 = arith.addf %12, %14 : vector<1x512xf32>
    %cst_6 = arith.constant 2.100000e+01 : f32
    %16 = vector.broadcast %cst_6 : f32 to vector<1x512xf32>
    %17 = arith.mulf %16, %8 : vector<1x512xf32>
    %18 = arith.subf %15, %17 : vector<1x512xf32>
    %cst_7 = arith.constant 1.000000e+00 : f32
    %19 = vector.broadcast %cst_7 : f32 to vector<1x512xf32>
    %20 = arith.cmpf olt, %3, %19 : vector<1x512xf32>
    %cst_8 = arith.constant 0.000000e+00 : f32
    %21 = vector.broadcast %cst_8 : f32 to vector<1x512xf32>
    %22 = arith.select %20, %18, %21 : vector<1x512xi1>, vector<1x512xf32>
    %cst_9 = arith.constant 2.000000e-01 : f32
    %23 = vector.broadcast %cst_9 : f32 to vector<1x512xf32>
    %24 = arith.mulf %23, %22 : vector<1x512xf32>
    %25 = tpu.reciprocal %0 : vector<1x512xf32> -> vector<1x512xf32>
    %26 = arith.mulf %24, %25 : vector<1x512xf32>
    %27 = vector.broadcast %1 : vector<8x1xf32> to vector<8x512xf32>
    %28 = vector.broadcast %3 : vector<1x512xf32> to vector<8x512xf32>
    %29 = arith.mulf %27, %28 : vector<8x512xf32>
    %30 = math.sin %29 : vector<8x512xf32>
    %31 = vector.broadcast %26 : vector<1x512xf32> to vector<8x512xf32>
    %32 = arith.mulf %30, %31 : vector<8x512xf32>
    %c0_10 = arith.constant 0 : index
    %c0_11 = arith.constant 0 : index
    %33 = vector.load %arg3[%c0_10, %c0_11] : memref<8x512xf32, #tpu.memory_space<vmem>>, vector<8x512xf32>
    tpu.vector_store %arg3[%c0_10, %c0_11], %32 {strides = array<i32>} : memref<8x512xf32, #tpu.memory_space<vmem>>, vector<8x512xf32>,
    return
  }
  func.func @transform_0(%arg0: i32) -> (i32, i32) {
    %c0_i32 = arith.constant 0 : i32
    %c0_i32_0 = arith.constant 0 : i32
    return %c0_i32, %arg0 : i32, i32
  }
  func.func @transform_1(%arg0: i32) -> (i32, i32) {
    %c0_i32 = arith.constant 0 : i32
    %c0_i32_0 = arith.constant 0 : i32
    %c0_i32_1 = arith.constant 0 : i32
    return %c0_i32, %c0_i32_0 : i32, i32
  }
  func.func @transform_2(%arg0: i32) -> (i32, i32) {
    %c0_i32 = arith.constant 0 : i32
    %c0_i32_0 = arith.constant 0 : i32
    return %c0_i32, %arg0 : i32, i32
  }
}

</mosaic_0001>

<bundles_post_ra>
// kernel: tpu_custom_call.1
= control target key start
LH: loop header
LB: loop body
LE: loop exit
PB: predicated region body
PF: predicated region fallthrough
CT: control target
= control target key end

     0   :  { %7 = vsyncpa [#allocation3], 0  ;;  %s1639_s0 = inlined_call_operand.vmem [shape: f32[1,1024], index: 0, kind: input, shape index: {}]   ;;  %s1640_s1 = inlined_call_operand.vmem [shape: f32[8,1], index: 1, kind: input, shape index: {}]   ;;  %s1641_s2 = inlined_call_operand.hbm [shape: f32[8,1024], index: 2, kind: output, shape index: {}]  }
   0x1   :  { %9 = vsyncpa [#allocation3 + $0x1], 0  ;;  %s1061_s9 = smov 0   ;;  %s1063_s10 = smov 0  }
   0x2   :  { %s1065_s11 = smov 0   ;;  %s1067_s12 = smov 0  }
   0x3 LB: > { %s1082_s13 = sadd.s32 4294967295, %s1037_s12   ;;  %s902_s14 = sadd.s32 4294967294, %s1037_s12   ;;  %s1037_s12 = sphi %s1067_s12, %s1653_s12   ;;  %s1033_s11 = sphi %s1065_s11, %s1652_s11   ;;  %s1029_s10 = sphi %s1063_s10, %s1651_s10   ;;  %s1025_s9 = sphi %s1061_s9, %s1650_s9  }
   0x4   : > { %s1086_s15 = sadd.s32 1, %s1037_s12   ;;  %s69_s16 = sadd.s32 1, %s1033_s11 }
   0x5   : > { %s66_s17 = ssub.s32 %s1037_s12, %s1086_s15  ;;  %p79_p0 = scmp.ne.s32.totalorder %s1033_s11, %s1029_s10 }
   0x6   : > { %p67_p1 = scmp.eq.s32.totalorder %s66_s17, 0  ;;  %p80_p2 = scmp.eq.s32.totalorder %s1082_s13, 1 }
   0x7   : > { %p85_p3 = scmp.ne.s32.totalorder %s1029_s10, %s1025_s9  ;;  %p86_p4 = scmp.eq.s32.totalorder %s902_s14, 1 }
   0x8   : > { %s1097_s18 = scalar_select %p67_p1, %s1033_s11, %s69_s16  }
   0x9   : > { %p1099_p5 = por %p80_p2, %p79_p0  ;;  %p1103_p6 = por %p86_p4, %p85_p3 }
   0xa   : > { %p905_p7 = scmp.ge.s32.totalorder %s1037_s12, 1  ;;  %p115_p8 = scmp.lt.s32.totalorder %s1037_s12, 3 }
   0xc   : > { %p116_p9 = pnand %p905_p7, %p115_p8 }
   0xd   : > { %s907_s23 = sshll.u32 (!%p116_p9), %s1082_s13, 2  ;;  %s133_s27 = sand.u32 (!%p116_p9), 1, %s1029_s10  }
   0xe   : > { %119 = sbr.rel (%p116_p9) target bundleno = 327 (0x147), region = 28  ;;  %p137_p10 = scmp.lt.s32.totalorder (!%p116_p9), %s907_s23, 7 }
   0xf   : > { %s906_s28 = sshll.u32 (!%p116_p9), %s133_s27, 5  ;;  %s925_s30 = sshll.u32 (!%p116_p9), %s1082_s13, 5 }
  0x10   : > { %s1591_s29 = scalar_lea.vmem (!%p116_p9), [#allocation2], %s906_s28  ;;  %s841_s5 = scalar_lea.hbm (!%p116_p9), %s1641_s2, %s925_s30 }
  0x11   : > { %s843_s6 = sshll.u32 (!%p116_p9), %s1591_s29, 4  ;;  %s845_s7 = sshll.u32 (!%p116_p9), %s841_s5, 4  ;;  %s844_s6 = int_to_ptr.vmem [resolvable:$true] %s843_s6  ;;  %s846_s7 = int_to_ptr.hbm [resolvable:$true] %s845_s7 }
  0x12   : > { %s830_s8 = scalar_lea.sflag (!%p116_p9), [#allocation3], %s133_s27  ;;  %s989_s13 = sshra.s32 (!%p116_p9), %s846_s7, 4  ;;  %s990_s13 = int_to_ptr.hbm [resolvable:$true] %s989_s13 }
  0x13   : > { %v143_v0 = vld [vmem:[%s1640_s1] sm:$0xff]  ;;  %v1039_v1 = vmov 0   ;;  %s1655_s23 = smov (!%p137_p10, %s907_s23), 7  ;;  %v1040_v62 = vmov 683565275   ;;  %s991_s14 = scalar_lea.hbm %s990_s13, 32 }
  0x14   : > { %972 = vset.pattern.permute.xlu0 %v1039_v1  ;;  %s139_s26 = scalar_lea.vmem %s1639_s0, %s1655_s23  ;;  %p992_p11 = scmp.ne.s32.totalorder %s990_s13, %s991_s14 }
  0x15   : > { %176 = vperm.xlu0 %972, %v143_v0   ;;  %v142_v2 = vld [vmem:[%s139_s26] sm:$0xf]  ;;  %v1041_v0 = vmov 2475754826   ;;  %s995_s21 = scalar_lea.hbm %s1641_s2, 64  ;;  %p996_p0 = scmp.lt.s32.totalorder %s990_s13, %s1641_s2 }
  0x16   : > { %v1117_v3 = vmul.f32 0.1, %v142_v2  ;;  %973 = vrcp.f32 %v142_v2  ;;  %v170_v14 = vand.u32 2147483648, %v142_v2  ;;  %vm164_vm0 = vweird.f32 %v142_v2  ;;  %p993_p12 = pnand %p992_p11, %p1099_p5  ;;  %p997_p1 = scmp.lt.s32.totalorder %s995_s21, %s991_s14 }
  0x17   : > { %v168_v16 = vand.u32 2147483647, %v142_v2 }
  0x18   : > { %v145_v4 = vmul.f32 %v1117_v3, %v1117_v3  ;;  %vm156_vm2 = vcmp.lt.f32.partialorder %v1117_v3, 1.0  ;;  %v171_v21 = vor.u32 1.1754944e-38, %v170_v14  ;;  %v180_v28 = vperm.slane %v1117_v3, 0  ;;  %p994_p13 = pneg %p993_p12  ;;  %p998_p2 = por %p997_p1, %p996_p0 }
  0x19   : > { %vm169_vm4 = vcmp.eq.f32.partialorder %v168_v16, 8.507059e+37  ;;  %v181_v29 = vperm.slane %v1117_v3, 1  ;;  %v182_v30 = vperm.slane %v1117_v3, 2 }
  0x1a   : > { %v146_v5 = vmul.f32 %v145_v4, %v145_v4  ;;  %p999_p3 = pnand %p998_p2, %p994_p13 }
  0x1c   : > { %v147_v6 = vmul.f32 %v146_v5, %v145_v4  ;;  %v974_v7 = vpop.eup %973 }
  0x1d   : > { %v160_v10 = vmul.f32 %v974_v7, %v142_v2  ;;  %vm165_vm1 = vweird.f32 %v974_v7 }
  0x1e   : > { %v148_v8 = vmul.f32 %v147_v6, %v1117_v3  ;;  %v150_v9 = vmul.f32 28.0, %v147_v6  ;;  %vm166_vm3 = vmor %vm164_vm0, %vm165_vm1  ;;  %v1042_v6 = vmov 2131351028  }
  0x1f   : > { %v161_v15 = vsub.f32 1.0, %v160_v10 }
  0x20   : > { %v149_v11 = vmul.f32 %v148_v8, %v1117_v3  ;;  %v151_v12 = vsub.f32 1.0, %v150_v9  ;;  %v152_v13 = vmul.f32 48.0, %v148_v8  ;;  %v1043_v9 = vmov 2102212464  }
  0x21   : > { %v162_v19 = vmul.f32 %v974_v7, %v161_v15  ;;  %v1045_v15 = vmov 1326507024  }
  0x22   : > { %v153_v17 = vadd.f32 %v152_v13, %v151_v12  ;;  %v154_v18 = vmul.f32 21.0, %v149_v11  ;;  %v1044_v12 = vmov 920167782  }
  0x23   : > { %v163_v22 = vadd.f32 %v974_v7, %v162_v19 }
  0x24   : > { %v155_v20 = vsub.f32 %v153_v17, %v154_v18 }
  0x25   : > { %v167_v25 = vsel %vm166_vm3, %v974_v7, %v163_v22 }
  0x26   : > { %v157_v23 = vsel %vm156_vm2, %v155_v20, 0.0  ;;  %v172_v26 = vsel %vm169_vm4, %v171_v21, %v167_v25 }
  0x27   : > { %v158_v24 = vmul.f32 0.2, %v157_v23 }
  0x29   : > { %v1124_v27 = vmul.f32 %v172_v26, %v158_v24 }
  0x87   : > { %v1129_v31 = vpop.permute.xlu0 %176 }
  0x88   : > { %v1132_v32 = vmul.f32 %v180_v28, %v1129_v31  ;;  %v1135_v33 = vmul.f32 %v181_v29, %v1129_v31  ;;  %v1138_v34 = vmul.f32 %v182_v30, %v1129_v31 }
  0x8a   : > { %v192_v35 = vand.u32 2147483647, %v1132_v32  ;;  %v195_v36 = vand.u32 2139095040, %v1132_v32  ;;  %v347_v37 = vand.u32 2147483647, %v1135_v33  ;;  %v350_v38 = vand.u32 2139095040, %v1135_v33 }
  0x8b   : > { %v505_v43 = vand.u32 2139095040, %v1138_v34 }
  0x8c   : > { %v196_v39 = vshrl.u32 %v195_v36, 23  ;;  %v199_v40 = vand.u32 8388607, %v192_v35  ;;  %v351_v41 = vshrl.u32 %v350_v38, 23  ;;  %v354_v42 = vand.u32 8388607, %v347_v37 }
  0x8d   : > { %v506_v50 = vshrl.u32 %v505_v43, 23 }
  0x8e   : > { %v908_v44 = vadd.s32 4294967169, %v196_v39  ;;  %v200_v45 = vor.u32 8388608, %v199_v40  ;;  %v911_v46 = vadd.s32 4294967169, %v351_v41  ;;  %v355_v47 = vor.u32 8388608, %v354_v42 }
  0x8f   : > { %v1153_v56 = vadd.s32 4294967169, %v506_v50 }
  0x90   : > { %v202_v48 = vadd.s32 1, %v908_v44  ;;  %v357_v49 = vadd.s32 1, %v911_v46  ;;  %v1149_v51 = vshll.u32 %v200_v45, 8  ;;  %v1151_v53 = vshll.u32 %v355_v47, 8 }
  0x92   : > { %vm203_vm5 = vcmp.gt.s32.totalorder %v202_v48, 0  ;;  %vm358_vm6 = vcmp.gt.s32.totalorder %v357_v49, 0  ;;  %v1156_v58 = vand.u32 65535, %v1149_v51  ;;  %v1159_v59 = vshrl.u32 %v1149_v51, 16 }
  0x93   : > { %v204_v52 = vsel %vm203_vm5, %v202_v48, 0  ;;  %v359_v55 = vsel %vm358_vm6, %v357_v49, 0  ;;  %v1168_v4 = vand.u32 65535, %v1151_v53 }
  0x94   : > { %v206_v54 = vand.u32 31, %v204_v52  ;;  %v1161_v60 = vand.u32 31, %v359_v55  ;;  %v1163_v61 = vshrl.u32 %v204_v52, 5  ;;  %v1210_v50 = vshrl.u32 %v359_v55, 5 }
  0x96   : > { %v207_v57 = vsub.s32 32, %v206_v54  ;;  %v209_v63 = vshll.u32 %v1040_v62, %v206_v54  ;;  %v212_v2 = vshll.u32 %v1041_v0, %v206_v54  ;;  %v215_v8 = vshll.u32 %v1042_v6, %v206_v54 }
  0x97   : > { %v218_v11 = vshll.u32 %v1043_v9, %v206_v54  ;;  %v221_v14 = vshll.u32 %v1044_v12, %v206_v54  ;;  %v1179_v20 = vsub.s32 32, %v1161_v60  ;;  %vm224_vm7 = vcmp.lt.s32.totalorder %v1163_v61, 1 }
  0x98   : > { %v210_v5 = vshrl.u32 %v1041_v0, %v207_v57  ;;  %v213_v7 = vshrl.u32 %v1042_v6, %v207_v57  ;;  %v216_v10 = vshrl.u32 %v1043_v9, %v207_v57  ;;  %v219_v13 = vshrl.u32 %v1044_v12, %v207_v57 }
  0x99   : > { %v222_v16 = vshrl.u32 %v1045_v15, %v207_v57  ;;  %vm225_vm8 = vcmp.lt.s32.totalorder %v1163_v61, 2  ;;  %v208_v23 = vshrl.u32 %v1040_v62, %v207_v57  ;;  %vm227_vm9 = vcmp.lt.s32.totalorder %v1163_v61, 4 }
  0x9a   : > { %v211_v17 = vor.u32 %v210_v5, %v209_v63  ;;  %v214_v18 = vor.u32 %v213_v7, %v212_v2  ;;  %v217_v19 = vor.u32 %v216_v10, %v215_v8  ;;  %v220_v21 = vor.u32 %v219_v13, %v218_v11 }
  0x9b   : > { %v223_v22 = vor.u32 %v222_v16, %v221_v14  ;;  %vm226_vm10 = vcmp.lt.s32.totalorder %v1163_v61, 3  ;;  %v364_v29 = vshll.u32 %v1040_v62, %v1161_v60  ;;  %v365_v39 = vshrl.u32 %v1041_v0, %v1179_v20 }
  0x9c   : > { %v232_v24 = vsel %vm224_vm7, %v211_v17, %v214_v18  ;;  %v236_v25 = vsel %vm224_vm7, %v214_v18, %v217_v19  ;;  %v233_v26 = vsel %vm227_vm9, %v220_v21, 920167782  ;;  %v229_v30 = vsel %vm227_vm9, %v217_v19, 2102212464 }
  0x9d   : > { %v237_v28 = vsel %vm227_vm9, %v223_v22, 1326507024  ;;  %v234_v36 = vsel %vm226_vm10, %v217_v19, %v233_v26  ;;  %v367_v42 = vshll.u32 %v1041_v0, %v1161_v60  ;;  %v368_v43 = vshrl.u32 %v1042_v6, %v1179_v20 }
  0x9e   : > { %v238_v38 = vsel %vm226_vm10, %v220_v21, %v237_v28  ;;  %v235_v40 = vsel %vm225_vm8, %v232_v24, %v234_v36  ;;  %v228_v48 = vsel %vm224_vm7, %v208_v23, %v211_v17  ;;  %v230_v49 = vsel %vm226_vm10, %v214_v18, %v229_v30 }
  0x9f   : > { %v239_v41 = vsel %vm225_vm8, %v236_v25, %v238_v38  ;;  %v265_v46 = vand.u32 65535, %v235_v40  ;;  %v266_v47 = vshrl.u32 %v235_v40, 16  ;;  %v1212_v52 = vor.u32 %v365_v39, %v364_v29 }
  0xa0   : > { %v243_v44 = vand.u32 65535, %v239_v41  ;;  %v244_v45 = vshrl.u32 %v239_v41, 16  ;;  %v1216_v63 = vor.u32 %v368_v43, %v367_v42  ;;  %v371_v2 = vshrl.u32 %v1043_v9, %v1179_v20 }
  0xa1   : > { %v268_v7 = vmul.u32 %v266_v47, %v1156_v58  ;;  %v269_v8 = vmul.u32 %v265_v46, %v1159_v59  ;;  %v370_v55 = vshll.u32 %v1042_v6, %v1161_v60  ;;  %v267_v13 = vmul.u32 %v265_v46, %v1156_v58 }
  0xa2   : > { %v246_v54 = vmul.u32 %v244_v45, %v1156_v58  ;;  %v247_v57 = vmul.u32 %v243_v44, %v1159_v59  ;;  %v245_v5 = vmul.u32 %v243_v44, %v1156_v58  ;;  %v248_v10 = vmul.u32 %v244_v45, %v1159_v59 }
  0xa3   : > { %v270_v14 = vmul.u32 %v266_v47, %v1159_v59  ;;  %v271_v19 = vshll.u32 %v268_v7, 16  ;;  %v273_v22 = vshll.u32 %v269_v8, 16  ;;  %v1228_v23 = vor.u32 %v371_v2, %v370_v55 }
  0xa4   : > { %v249_v11 = vshll.u32 %v246_v54, 16  ;;  %v250_v16 = vshrl.u32 %v246_v54, 16  ;;  %v251_v17 = vshll.u32 %v247_v57, 16  ;;  %v252_v18 = vshrl.u32 %v247_v57, 16 }
  0xa5   : > { %vm275_vm12 = vc.u32 %v267_v13, %v271_v19  ;;  %v277_v25 = vadd.s32 %v271_v19, %v267_v13  ;;  %v374_v26 = vshrl.u32 %v1044_v12, %v1179_v20  ;;  %v373_v59 = vshll.u32 %v1043_v9, %v1161_v60 }
  0xa6   : > { %vm253_vm11 = vc.u32 %v245_v5, %v249_v11  ;;  %v255_v21 = vadd.s32 %v249_v11, %v245_v5  ;;  %v276_v58 = vsel %vm275_vm12, 1, %v1039_v1  ;;  %v376_v36 = vshll.u32 %v1044_v12, %v1161_v60 }
  0xa7   : > { %v254_v24 = vsel %vm253_vm11, 1, %v1039_v1  ;;  %v278_v30 = vadd.s32 %v276_v58, %v270_v14  ;;  %vm279_vm14 = vc.u32 %v277_v25, %v273_v22  ;;  %v375_v40 = vor.u32 %v374_v26, %v373_v59 }
  0xa8   : > { %v256_v28 = vadd.s32 %v254_v24, %v248_v10  ;;  %vm257_vm13 = vc.u32 %v255_v21, %v251_v17  ;;  %v280_v39 = vsel %vm279_vm14, 1, %v1039_v1  ;;  %v377_v41 = vshrl.u32 %v1045_v15, %v1179_v20 }
  0xa9   : > { %v258_v29 = vsel %vm257_vm13, 1, %v1039_v1  ;;  %v272_v42 = vshrl.u32 %v268_v7, 16  ;;  %v274_v43 = vshrl.u32 %v269_v8, 16  ;;  %v1242_v44 = vadd.s32 %v277_v25, %v273_v22 }
  0xaa   : > { %v260_v38 = vadd.s32 %v258_v29, %v256_v28  ;;  %v282_v45 = vadd.s32 %v280_v39, %v278_v30  ;;  %v378_v47 = vor.u32 %v377_v41, %v376_v36  ;;  %vm379_vm15 = vcmp.lt.s32.totalorder %v1210_v50, 1 }
  0xab   : > { %vm382_vm0 = vcmp.lt.s32.totalorder %v1210_v50, 4  ;;  %vm381_vm1 = vcmp.lt.s32.totalorder %v1210_v50, 3  ;;  %v387_v60 = vsel %vm379_vm15, %v1212_v52, %v1216_v63  ;;  %vm380_vm2 = vcmp.lt.s32.totalorder %v1210_v50, 2 }
  0xac   : > { %v261_v46 = vadd.s32 %v260_v38, %v250_v16  ;;  %v283_v54 = vadd.s32 %v282_v45, %v272_v42  ;;  %v388_v57 = vsel %vm382_vm0, %v375_v40, 920167782  ;;  %v391_v7 = vsel %vm379_vm15, %v1216_v63, %v1228_v23 }
  0xad   : > { %v389_v5 = vsel %vm381_vm1, %v1228_v23, %v388_v57  ;;  %v231_v8 = vsel %vm225_vm8, %v228_v48, %v230_v49  ;;  %v392_v11 = vsel %vm382_vm0, %v378_v47, 1326507024  ;;  %v397_v14 = vshrl.u32 %v1151_v53, 16 }
  0xae   : > { %v1253_v2 = vadd.s32 %v261_v46, %v252_v18  ;;  %v284_v55 = vadd.s32 %v283_v54, %v274_v43  ;;  %v390_v10 = vsel %vm380_vm2, %v387_v60, %v389_v5  ;;  %v393_v13 = vsel %vm381_vm1, %v375_v40, %v392_v11 }
  0xaf   : > { %v420_v16 = vand.u32 65535, %v390_v10  ;;  %v394_v61 = vsel %vm380_vm2, %v391_v7, %v393_v13  ;;  %v421_v48 = vshrl.u32 %v390_v10, 16  ;;  %v512_v49 = vadd.s32 1, %v1153_v56 }
  0xb0   : > { %vm287_vm3 = vc.u32 %v1253_v2, %v1242_v44  ;;  %v288_v17 = vadd.s32 1, %v284_v55  ;;  %v285_v18 = vmul.u32 %v1149_v51, %v231_v8  ;;  %v398_v19 = vand.u32 65535, %v394_v61 }
  0xb1   : > { %v399_v21 = vshrl.u32 %v394_v61, 16  ;;  %v423_v24 = vmul.u32 %v421_v48, %v1168_v4  ;;  %v424_v25 = vmul.u32 %v420_v16, %v397_v14  ;;  %v422_v59 = vmul.u32 %v420_v16, %v1168_v4 }
  0xb2   : > { %v289_v22 = vsel %vm287_vm3, %v288_v17, %v284_v55  ;;  %v402_v58 = vmul.u32 %v398_v19, %v397_v14  ;;  %v425_v29 = vmul.u32 %v421_v48, %v397_v14  ;;  %vm513_vm4 = vcmp.gt.s32.totalorder %v512_v49, 0 }
  0xb3   : > { %v290_v26 = vadd.s32 %v289_v22, %v285_v18  ;;  %v401_v28 = vmul.u32 %v399_v21, %v1168_v4  ;;  %v426_v30 = vshll.u32 %v423_v24, 16  ;;  %v400_v56 = vmul.u32 %v398_v19, %v1168_v4 }
  0xb4   : > { %v403_v38 = vmul.u32 %v399_v21, %v397_v14  ;;  %v406_v39 = vshll.u32 %v402_v58, 16  ;;  %v428_v40 = vshll.u32 %v424_v25, 16  ;;  %v384_v4 = vsel %vm382_vm0, %v1228_v23, 2102212464 }
  0xb5   : > { %v291_v36 = vadd.s32 536870912, %v290_v26  ;;  %v404_v51 = vshll.u32 %v401_v28, 16  ;;  %vm430_vm5 = vc.u32 %v422_v59, %v426_v30  ;;  %v432_v41 = vadd.s32 %v426_v30, %v422_v59 }
  0xb6   : > { %v431_v45 = vsel %vm430_vm5, 1, %v1039_v1  ;;  %v363_v57 = vshrl.u32 %v1040_v62, %v1179_v20  ;;  %v514_v8 = vsel %vm513_vm4, %v512_v49, 0  ;;  %v405_v10 = vshrl.u32 %v401_v28, 16 }
  0xb7   : > { %v1282_v42 = vshrl.u32 %v291_v36, 30  ;;  %vm408_vm6 = vc.u32 %v400_v56, %v404_v51  ;;  %v410_v43 = vadd.s32 %v404_v51, %v400_v56  ;;  %v433_v47 = vadd.s32 %v431_v45, %v425_v29 }
  0xb8   : > { %v409_v46 = vsel %vm408_vm6, 1, %v1039_v1  ;;  %vm434_vm7 = vc.u32 %v432_v41, %v428_v40  ;;  %v383_v23 = vsel %vm379_vm15, %v363_v57, %v1212_v52  ;;  %v385_v14 = vsel %vm381_vm1, %v1216_v63, %v384_v4 }
  0xb9   : > { %v293_v54 = vshll.u32 %v1282_v42, 30  ;;  %v411_v60 = vadd.s32 %v409_v46, %v403_v38  ;;  %vm412_vm8 = vc.u32 %v410_v43, %v406_v39  ;;  %v435_v7 = vsel %vm434_vm7, 1, %v1039_v1 }
  0xba   : > { %v413_v5 = vsel %vm412_vm8, 1, %v1039_v1  ;;  %v437_v13 = vadd.s32 %v435_v7, %v433_v47  ;;  %v427_v20 = vshrl.u32 %v423_v24, 16  ;;  %v516_v16 = vand.u32 31, %v514_v8 }
  0xbb   : > { %v1295_v55 = vsub.s32 %v290_v26, %v293_v54  ;;  %v415_v11 = vadd.s32 %v413_v5, %v411_v60  ;;  %v407_v61 = vshrl.u32 %v402_v58, 16  ;;  %v429_v49 = vshrl.u32 %v424_v25, 16 }
  0xbc   : > { %v438_v18 = vadd.s32 %v437_v13, %v427_v20  ;;  %v502_v52 = vand.u32 2147483647, %v1138_v34  ;;  %v1309_v22 = vsub.s32 32, %v516_v16  ;;  %v386_v63 = vsel %vm380_vm2, %v383_v23, %v385_v14 }
  0xbd   : > { %vm295_vm9 = vcmp.lt.s32.totalorder %v1295_v55, 0  ;;  %v296_v17 = vsub.s32 0, %v1295_v55  ;;  %v416_v48 = vadd.s32 %v415_v11, %v405_v10  ;;  %v1313_v24 = vadd.s32 %v432_v41, %v428_v40 }
  0xbe   : > { %v439_v28 = vadd.s32 %v438_v18, %v429_v49  ;;  %v440_v58 = vmul.u32 %v1151_v53, %v386_v63  ;;  %v509_v29 = vand.u32 8388607, %v502_v52  ;;  %v1320_v30 = vshrl.u32 %v514_v8, 5 }
  0xbf   : > { %v297_v19 = vsel %vm295_vm9, %v296_v17, %v1295_v55  ;;  %v1306_v21 = vadd.s32 %v416_v48, %v407_v61  ;;  %v529_v36 = vshrl.u32 %v1044_v12, %v1309_v22  ;;  %v523_v56 = vshrl.u32 %v1042_v6, %v1309_v22 }
  0xc0   : > { %v298_v26 = vclz %v297_v19  ;;  %v443_v25 = vadd.s32 1, %v439_v28  ;;  %v526_v38 = vshrl.u32 %v1043_v9, %v1309_v22  ;;  %v528_v51 = vshll.u32 %v1043_v9, %v516_v16 }
  0xc1   : > { %vm442_vm10 = vc.u32 %v1306_v21, %v1313_v24  ;;  %v520_v53 = vshrl.u32 %v1041_v0, %v1309_v22  ;;  %v532_v40 = vshrl.u32 %v1045_v15, %v1309_v22  ;;  %v522_v41 = vshll.u32 %v1041_v0, %v516_v16 }
  0xc2   : > { %v909_v59 = vadd.s32 4294967294, %v298_v26  ;;  %v444_v50 = vsel %vm442_vm10, %v443_v25, %v439_v28  ;;  %v525_v43 = vshll.u32 %v1042_v6, %v516_v16  ;;  %v530_v45 = vor.u32 %v529_v36, %v528_v51 }
  0xc3   : > { %v445_v39 = vadd.s32 %v444_v50, %v440_v58  ;;  %v519_v47 = vshll.u32 %v1040_v62, %v516_v16  ;;  %v531_v54 = vshll.u32 %v1044_v12, %v516_v16  ;;  %v510_v60 = vor.u32 8388608, %v509_v29 }
  0xc4   : > { %vm910_vm11 = vcmp.lt.s32.totalorder %v909_v59, 0  ;;  %v1337_v57 = vor.u32 %v523_v56, %v522_v41  ;;  %v1339_v5 = vor.u32 %v526_v38, %v525_v43  ;;  %vm537_vm12 = vcmp.lt.s32.totalorder %v1320_v30, 4 }
  0xc5   : > { %v446_v46 = vadd.s32 536870912, %v445_v39  ;;  %v301_v4 = vsel %vm910_vm11, 0, %v909_v59  ;;  %v1343_v8 = vor.u32 %v520_v53, %v519_v47  ;;  %v533_v10 = vor.u32 %v532_v40, %v531_v54 }
  0xc6   : > { %v543_v11 = vsel %vm537_vm12, %v530_v45, 920167782  ;;  %v306_v13 = vsub.s32 4294967266, %v301_v4  ;;  %vm534_vm13 = vcmp.lt.s32.totalorder %v1320_v30, 1  ;;  %vm536_vm14 = vcmp.lt.s32.totalorder %v1320_v30, 3 }
  0xc7   : > { %v1341_v7 = vshrl.u32 %v446_v46, 30  ;;  %v546_v14 = vsel %vm534_vm13, %v1337_v57, %v1339_v5  ;;  %v1355_v20 = vshll.u32 %v510_v60, 8  ;;  %v542_v17 = vsel %vm534_vm13, %v1343_v8, %v1337_v57 }
  0xc8   : > { %v544_v61 = vsel %vm536_vm14, %v1339_v5, %v543_v11  ;;  %v547_v48 = vsel %vm537_vm12, %v533_v10, 1326507024  ;;  %vm535_vm15 = vcmp.lt.s32.totalorder %v1320_v30, 2  ;;  %v307_v18 = vadd.s32 127, %v306_v13 }
  0xc9   : > { %v448_v23 = vshll.u32 %v1341_v7, 30  ;;  %v548_v49 = vsel %vm536_vm14, %v530_v45, %v547_v48  ;;  %v545_v63 = vsel %vm535_vm15, %v542_v17, %v544_v61  ;;  %v551_v28 = vand.u32 65535, %v1355_v20 }
  0xca   : > { %v549_v26 = vsel %vm535_vm15, %v546_v14, %v548_v49  ;;  %v302_v58 = vsub.s32 32, %v301_v4  ;;  %v552_v36 = vshrl.u32 %v1355_v20, 16  ;;  %v286_v38 = vadd.s32 %v1242_v44, %v1253_v2 }
  0xcb   : > { %v1357_v16 = vsub.s32 %v445_v39, %v448_v23  ;;  %v553_v59 = vand.u32 65535, %v549_v26  ;;  %v554_v25 = vshrl.u32 %v549_v26, 16  ;;  %v308_v51 = vshll.u32 %v307_v18, 23 }
  0xcc   : > { %v576_v53 = vshrl.u32 %v545_v63, 16  ;;  %v575_v45 = vand.u32 65535, %v545_v63  ;;  %v183_v46 = vperm.slane %v1117_v3, 3  ;;  %v304_v47 = vshrl.u32 %v286_v38, %v302_v58 }
  0xcd   : > { %vm450_vm0 = vcmp.lt.s32.totalorder %v1357_v16, 0  ;;  %v451_v19 = vsub.s32 0, %v1357_v16  ;;  %v556_v56 = vmul.u32 %v554_v25, %v551_v28  ;;  %v557_v39 = vmul.u32 %v553_v59, %v552_v36 }
  0xce   : > { %v555_v41 = vmul.u32 %v553_v59, %v551_v28  ;;  %v558_v54 = vmul.u32 %v554_v25, %v552_v36  ;;  %v578_v23 = vmul.u32 %v576_v53, %v551_v28  ;;  %v303_v44 = vshll.u32 %v1295_v55, %v301_v4 }
  0xcf   : > { %v452_v29 = vsel %vm450_vm0, %v451_v19, %v1357_v16  ;;  %v559_v43 = vshll.u32 %v556_v56, 16  ;;  %v561_v11 = vshll.u32 %v557_v39, 16  ;;  %v309_v2 = vor.u32 4788187, %v308_v51 }
  0xd0   : > { %v453_v50 = vclz %v452_v29  ;;  %v579_v14 = vmul.u32 %v575_v45, %v552_v36  ;;  %v581_v48 = vshll.u32 %v578_v23, 16  ;;  %v305_v49 = vor.u32 %v304_v47, %v303_v44 }
  0xd1   : > { %vm563_vm2 = vc.u32 %v555_v41, %v559_v43  ;;  %v565_v60 = vadd.s32 %v559_v43, %v555_v41  ;;  %v1387_v18 = vmul.f32 %v183_v46, %v1129_v31  ;;  %v577_v63 = vmul.u32 %v575_v45, %v551_v28 }
  0xd2   : > { %v912_v40 = vadd.s32 4294967294, %v453_v50  ;;  %v564_v13 = vsel %vm563_vm2, 1, %v1039_v1  ;;  %v310_v59 = vand.u32 2147483647, %v309_v2  ;;  %v441_v25 = vadd.s32 %v1313_v24, %v1306_v21 }
  0xd3   : > { %v566_v61 = vadd.s32 %v564_v13, %v558_v54  ;;  %vm567_vm3 = vc.u32 %v565_v60, %v561_v11  ;;  %v560_v4 = vshrl.u32 %v556_v56, 16  ;;  %v580_v58 = vmul.u32 %v576_v53, %v552_v36 }
  0xd4   : > { %vm913_vm1 = vcmp.lt.s32.totalorder %v912_v40, 0  ;;  %v568_v3 = vsel %vm567_vm3, 1, %v1039_v1  ;;  %v583_v29 = vshll.u32 %v579_v14, 16  ;;  %vm585_vm4 = vc.u32 %v577_v63, %v581_v48 }
  0xd5   : > { %v456_v10 = vsel %vm913_vm1, 0, %v912_v40  ;;  %v570_v26 = vadd.s32 %v568_v3, %v566_v61  ;;  %v587_v50 = vadd.s32 %v581_v48, %v577_v63  ;;  %v312_v38 = vcvt.s32.f32 %v305_v49 }
  0xd6   : > { %v461_v17 = vsub.s32 4294967266, %v456_v10  ;;  %v457_v55 = vsub.s32 32, %v456_v10  ;;  %v586_v41 = vsel %vm585_vm4, 1, %v1039_v1  ;;  %v518_v31 = vshrl.u32 %v1040_v62, %v1309_v22 }
  0xd7   : > { %v571_v40 = vadd.s32 %v570_v26, %v560_v4  ;;  %v539_v28 = vsel %vm537_vm12, %v1339_v5, 2102212464  ;;  %v588_v43 = vadd.s32 %v586_v41, %v580_v58  ;;  %vm589_vm5 = vc.u32 %v587_v50, %v583_v29 }
  0xd8   : > { %v462_v19 = vadd.s32 127, %v461_v17  ;;  %v313_v21 = vmul.f32 %v312_v38, %v310_v59  ;;  %v459_v24 = vshrl.u32 %v441_v25, %v457_v55  ;;  %v562_v36 = vshrl.u32 %v557_v39, 16 }
  0xd9   : > { %v590_v56 = vsel %vm589_vm5, 1, %v1039_v1  ;;  %v538_v53 = vsel %vm534_vm13, %v518_v31, %v1343_v8  ;;  %v582_v45 = vshrl.u32 %v578_v23, 16  ;;  %v458_v47 = vshll.u32 %v1357_v16, %v456_v10 }
  0xda   : > { %v463_v51 = vshll.u32 %v462_v19, 23  ;;  %v592_v46 = vadd.s32 %v590_v56, %v588_v43  ;;  %v540_v5 = vsel %vm536_vm14, %v1337_v57, %v539_v28  ;;  %v1405_v54 = vadd.s32 %v571_v40, %v562_v36 }
  0xdb   : > { %v584_v60 = vshrl.u32 %v579_v14, 16  ;;  %v314_v39 = vxor.u32 2147483648, %v313_v21  ;;  %v460_v13 = vor.u32 %v459_v24, %v458_v47  ;;  %v1407_v44 = vadd.s32 %v587_v50, %v583_v29 }
  0xdc   : > { %v464_v22 = vor.u32 4788187, %v463_v51  ;;  %v593_v11 = vadd.s32 %v592_v46, %v582_v45  ;;  %v660_v2 = vand.u32 2139095040, %v1387_v18  ;;  %v541_v8 = vsel %vm535_vm15, %v538_v53, %v540_v5 }
  0xdd   : > { %vm597_vm6 = vc.u32 %v1405_v54, %v1407_v44  ;;  %vm194_vm7 = vcmp.lt.s32.totalorder %v1132_v32, 0  ;;  %v467_v17 = vcvt.s32.f32 %v460_v13  ;;  %v595_v61 = vmul.u32 %v1355_v20, %v541_v8 }
  0xde   : > { %v594_v23 = vadd.s32 %v593_v11, %v584_v60  ;;  %v465_v16 = vand.u32 2147483647, %v464_v22  ;;  %v661_v10 = vshrl.u32 %v660_v2, 23  ;;  %v315_v14 = vsel %vm194_vm7, %v314_v39, %v313_v21 }
  0xdf   : > { %vm1420_vm8 = vcmp.le.f32.partialorder %v192_v35, 0.7853982  ;;  %v657_v58 = vand.u32 2147483647, %v1387_v18  ;;  %v316_v29 = vsub.s32 4, %v1282_v42  ;;  %vm349_vm10 = vcmp.lt.s32.totalorder %v1135_v33, 0 }
  0xe0   : > { %v598_v57 = vadd.s32 1, %v594_v23  ;;  %v917_v48 = vadd.s32 4294967169, %v661_v10  ;;  %v468_v3 = vmul.f32 %v467_v17, %v465_v16  ;;  %v1427_v63 = vsel %vm1420_vm8, %v1132_v32, %v315_v14 }
  0xe1   : > { %v1431_v20 = vmul.f32 %v1427_v63, %v1427_v63  ;;  %v471_v38 = vsub.s32 4, %v1341_v7  ;;  %v664_v28 = vand.u32 8388607, %v657_v58  ;;  %v1448_v43 = vsel %vm194_vm7, %v316_v29, %v1282_v42 }
  0xe2   : > { %v599_v49 = vsel %vm597_vm6, %v598_v57, %v594_v23  ;;  %v667_v26 = vadd.s32 1, %v917_v48  ;;  %v469_v55 = vxor.u32 2147483648, %v468_v3  ;;  %vm1452_vm11 = vcmp.le.f32.partialorder %v347_v37, 0.7853982 }
  0xe3   : > { %v600_v19 = vadd.s32 %v599_v49, %v595_v61  ;;  %v321_v40 = vmul.f32 -0.001358992, %v1431_v20  ;;  %v328_v36 = vmul.f32 -0.00019511016, %v1431_v20  ;;  %v1458_v56 = vsel %vm349_vm10, %v471_v38, %v1341_v7 }
  0xe4   : > { %vm668_vm9 = vcmp.gt.s32.totalorder %v667_v26, 0  ;;  %v470_v41 = vsel %vm349_vm10, %v469_v55, %v468_v3  ;;  %v665_v7 = vor.u32 8388608, %v664_v28  ;;  %v596_v48 = vadd.s32 %v1407_v44, %v1405_v54 }
  0xe5   : > { %v601_v59 = vadd.s32 536870912, %v600_v19  ;;  %v669_v25 = vsel %vm668_vm9, %v667_v26, 0  ;;  %v1463_v53 = vsel %vm1452_vm11, %v1135_v33, %v470_v41  ;;  %v1467_v45 = vadd.f32 0.041655596, %v321_v40 }
  0xe6   : > { %v671_v4 = vand.u32 31, %v669_v25  ;;  %v1478_v11 = vmul.f32 %v1463_v53, %v1463_v53  ;;  %v1480_v39 = vshrl.u32 %v669_v25, 5  ;;  %v329_v8 = vadd.f32 0.008332121, %v328_v36 }
  0xe7   : > { %v1433_v35 = vshrl.u32 %v601_v59, 30  ;;  %v1492_v49 = vshll.u32 %v665_v7, 8  ;;  %vm504_vm2 = vcmp.lt.s32.totalorder %v1138_v34, 0  ;;  %vm1524_vm3 = vcmp.le.f32.partialorder %v502_v52, 0.7853982 }
  0xe8   : > { %v1440_v51 = vsub.s32 32, %v671_v4  ;;  %v674_v5 = vshll.u32 %v1040_v62, %v671_v4  ;;  %v677_v13 = vshll.u32 %v1041_v0, %v671_v4  ;;  %v683_v2 = vshll.u32 %v1043_v9, %v671_v4 }
  0xe9   : > { %v603_v50 = vshll.u32 %v1433_v35, 30  ;;  %v680_v10 = vshll.u32 %v1042_v6, %v671_v4  ;;  %v686_v17 = vshll.u32 %v1044_v12, %v671_v4  ;;  %vm689_vm14 = vcmp.lt.s32.totalorder %v1480_v39, 1 }
  0xea   : > { %v675_v42 = vshrl.u32 %v1041_v0, %v1440_v51  ;;  %v678_v46 = vshrl.u32 %v1042_v6, %v1440_v51  ;;  %v684_v47 = vshrl.u32 %v1044_v12, %v1440_v51  ;;  %v681_v60 = vshrl.u32 %v1043_v9, %v1440_v51 }
  0xeb   : > { %v604_v31 = vsub.s32 %v600_v19, %v603_v50  ;;  %v687_v61 = vshrl.u32 %v1045_v15, %v1440_v51  ;;  %v483_v9 = vmul.f32 -0.00019511016, %v1478_v11  ;;  %vm690_vm15 = vcmp.lt.s32.totalorder %v1480_v39, 2 }
  0xec   : > { %v676_v16 = vor.u32 %v675_v42, %v674_v5  ;;  %v1485_v57 = vor.u32 %v678_v46, %v677_v13  ;;  %v685_v14 = vor.u32 %v684_v47, %v683_v2  ;;  %v682_v0 = vor.u32 %v681_v60, %v680_v10 }
  0xed   : > { %vm605_vm12 = vcmp.lt.s32.totalorder %v604_v31, 0  ;;  %v606_v24 = vsub.s32 0, %v604_v31  ;;  %v688_v19 = vor.u32 %v687_v61, %v686_v17  ;;  %vm692_vm0 = vcmp.lt.s32.totalorder %v1480_v39, 4 }
  0xee   : > { %vm691_vm1 = vcmp.lt.s32.totalorder %v1480_v39, 3  ;;  %v697_v15 = vsel %vm689_vm14, %v676_v16, %v1485_v57  ;;  %v698_v54 = vsel %vm692_vm0, %v685_v14, 920167782  ;;  %v701_v55 = vsel %vm689_vm14, %v1485_v57, %v682_v0 }
  0xef   : > { %v607_v37 = vsel %vm605_vm12, %v606_v24, %v604_v31  ;;  %v699_v25 = vsel %vm691_vm1, %v682_v0, %v698_v54  ;;  %v330_v4 = vmul.f32 %v329_v8, %v1431_v20  ;;  %v484_v29 = vadd.f32 0.008332121, %v483_v9 }
  0xf0   : > { %v608_v22 = vclz %v607_v37  ;;  %v700_v50 = vsel %vm690_vm15, %v697_v15, %v699_v25  ;;  %v702_v38 = vsel %vm692_vm0, %v688_v19, 1326507024  ;;  %v706_v36 = vand.u32 65535, %v1492_v49 }
  0xf1   : > { %v730_v28 = vand.u32 65535, %v700_v50  ;;  %v707_v42 = vshrl.u32 %v1492_v49, 16  ;;  %v731_v37 = vshrl.u32 %v700_v50, 16  ;;  %v476_v46 = vmul.f32 -0.001358992, %v1478_v11 }
  0xf2   : > { %v915_v23 = vadd.s32 4294967294, %v608_v22  ;;  %v485_v60 = vmul.f32 %v484_v29, %v1478_v11  ;;  %v673_v13 = vshrl.u32 %v1040_v62, %v1440_v51 }
  0xf3   : > { %v733_v2 = vmul.u32 %v731_v37, %v706_v36  ;;  %v734_v8 = vmul.u32 %v730_v28, %v707_v42  ;;  %v732_v61 = vmul.u32 %v730_v28, %v706_v36 }
  0xf4   : > { %vm916_vm13 = vcmp.lt.s32.totalorder %v915_v23, 0  ;;  %v693_v52 = vsel %vm689_vm14, %v673_v13, %v676_v16 }
  0xf5   : > { %v611_v3 = vsel %vm916_vm13, 0, %v915_v23  ;;  %v736_v9 = vshll.u32 %v733_v2, 16  ;;  %v738_v15 = vshll.u32 %v734_v8, 16 }
  0xf6   : > { %v612_v6 = vsub.s32 32, %v611_v3  ;;  %v616_v26 = vsub.s32 4294967266, %v611_v3  ;;  %v613_v12 = vshll.u32 %v604_v31, %v611_v3  ;;  %v703_v31 = vsel %vm691_vm1, %v685_v14, %v702_v38 }
  0xf7   : > { %v704_v24 = vsel %vm690_vm15, %v701_v55, %v703_v31  ;;  %vm740_vm4 = vc.u32 %v732_v61, %v736_v9  ;;  %v742_v62 = vadd.s32 %v736_v9, %v732_v61 }
  0xf8   : > { %v614_v44 = vshrl.u32 %v596_v48, %v612_v6  ;;  %v617_v59 = vadd.s32 127, %v616_v26  ;;  %v708_v7 = vand.u32 65535, %v704_v24  ;;  %v709_v5 = vshrl.u32 %v704_v24, 16 }
  0xf9   : > { %v735_v48 = vmul.u32 %v731_v37, %v707_v42  ;;  %vm744_vm6 = vc.u32 %v742_v62, %v738_v15  ;;  %v477_v37 = vadd.f32 0.041655596, %v476_v46 }
  0xfa   : > { %v615_v40 = vor.u32 %v614_v44, %v613_v12  ;;  %v618_v41 = vshll.u32 %v617_v59, 23  ;;  %v711_v14 = vmul.u32 %v709_v5, %v706_v36  ;;  %v712_v17 = vmul.u32 %v708_v7, %v707_v42 }
  0xfb   : > { %v710_v19 = vmul.u32 %v708_v7, %v706_v36  ;;  %v713_v6 = vmul.u32 %v709_v5, %v707_v42  ;;  %v741_v44 = vsel %vm740_vm4, 1, %v1039_v1  ;;  %v694_v59 = vsel %vm692_vm0, %v682_v0, 2102212464 }
  0xfc   : > { %v619_v22 = vor.u32 4788187, %v618_v41  ;;  %v622_v10 = vcvt.s32.f32 %v615_v40  ;;  %v714_v26 = vshll.u32 %v711_v14, 16  ;;  %v716_v12 = vshll.u32 %v712_v17, 16 }
  0xfd   : > { %v743_v25 = vadd.s32 %v741_v44, %v735_v48  ;;  %v745_v50 = vsel %vm744_vm6, 1, %v1039_v1  ;;  %v737_v41 = vshrl.u32 %v733_v2, 16  ;;  %v695_v28 = vsel %vm691_vm1, %v1485_v57, %v694_v59 }
  0xfe   : > { %v620_v23 = vand.u32 2147483647, %v619_v22  ;;  %vm718_vm5 = vc.u32 %v710_v19, %v714_v26  ;;  %v720_v54 = vadd.s32 %v714_v26, %v710_v19  ;;  %v715_v24 = vshrl.u32 %v711_v14, 16 }
  0xff   : > { %v719_v16 = vsel %vm718_vm5, 1, %v1039_v1  ;;  %v747_v31 = vadd.s32 %v745_v50, %v743_v25  ;;  %v331_v42 = vadd.f32 -0.16666654, %v330_v4  ;;  %v739_v22 = vshrl.u32 %v734_v8, 16 }
 0x100   : > { %v623_v3 = vmul.f32 %v622_v10, %v620_v23  ;;  %v721_v29 = vadd.s32 %v719_v16, %v713_v6  ;;  %vm722_vm7 = vc.u32 %v720_v54, %v716_v12  ;;  %v717_v23 = vshrl.u32 %v712_v17, 16 }
 0x101   : > { %v723_v40 = vsel %vm722_vm7, 1, %v1039_v1  ;;  %v748_v7 = vadd.s32 %v747_v31, %v737_v41  ;;  %v323_v1 = vmul.f32 %v1467_v45, %v1431_v20  ;;  %v486_v2 = vadd.f32 -0.16666654, %v485_v60 }
 0x102   : > { %v624_v51 = vxor.u32 2147483648, %v623_v3  ;;  %v725_v36 = vadd.s32 %v723_v40, %v721_v29  ;;  %v696_v61 = vsel %vm690_vm15, %v693_v52, %v695_v28  ;;  %v1553_v4 = vadd.s32 %v742_v62, %v738_v15 }
 0x103   : > { %v749_v48 = vadd.s32 %v748_v7, %v739_v22  ;;  %v332_v46 = vmul.f32 %v331_v42, %v1431_v20  ;;  %v478_v8 = vmul.f32 %v477_v37, %v1478_v11  ;;  %v626_v17 = vsub.s32 4, %v1433_v35 }
 0x104   : > { %v625_v55 = vsel %vm504_vm2, %v624_v51, %v623_v3  ;;  %v726_v10 = vadd.s32 %v725_v36, %v715_v24  ;;  %v750_v60 = vmul.u32 %v1492_v49, %v696_v61  ;;  %v487_v39 = vmul.f32 %v486_v2, %v1478_v11 }
 0x105   : > { %v628_v38 = vsel %vm1524_vm3, %v1138_v34, %v625_v55  ;;  %v753_v3 = vadd.s32 1, %v749_v48  ;;  %v324_v6 = vadd.f32 -0.4999988, %v323_v1  ;;  %v319_v15 = vsel %vm1420_vm8, 0, %v1448_v43 }
 0x106   : > { %v630_v0 = vmul.f32 %v628_v38, %v628_v38  ;;  %v1551_v14 = vadd.s32 %v726_v10, %v717_v23  ;;  %v474_v62 = vsel %vm1452_vm11, 0, %v1458_v56  ;;  %v479_v51 = vadd.f32 -0.4999988, %v478_v8 }
 0x107   : > { %v627_v49 = vsel %vm504_vm2, %v626_v17, %v1433_v35  ;;  %v333_v54 = vadd.f32 1.0, %v332_v46  ;;  %v488_v25 = vadd.f32 1.0, %v487_v39  ;;  %v325_v55 = vmul.f32 %v324_v6, %v1431_v20 }
 0x108   : > { %v631_v5 = vmul.f32 -0.001358992, %v630_v0  ;;  %v638_v13 = vmul.f32 -0.00019511016, %v630_v0  ;;  %vm752_vm9 = vc.u32 %v1551_v14, %v1553_v4  ;;  %v629_v30 = vsel %vm1524_vm3, 0, %v627_v49 }
 0x109   : > { %v754_v52 = vsel %vm752_vm9, %v753_v3, %v749_v48  ;;  %v336_v21 = vadd.s32 3, %v319_v15  ;;  %v480_v56 = vmul.f32 %v479_v51, %v1478_v11  ;;  %v491_v50 = vadd.s32 3, %v474_v62 }
 0x10a   : > { %v632_v9 = vadd.f32 0.041655596, %v631_v5  ;;  %v639_v57 = vadd.f32 0.008332121, %v638_v13  ;;  %v755_v12 = vadd.s32 %v754_v52, %v750_v60  ;;  %v334_v40 = vmul.f32 %v333_v54, %v1427_v63 }
 0x10b   : > { %v489_v31 = vmul.f32 %v488_v25, %v1463_v53  ;;  %v646_v28 = vadd.s32 3, %v629_v30  ;;  %v326_v24 = vadd.f32 1.0, %v325_v55  ;;  %v337_v47 = vand.u32 3, %v336_v21 }
 0x10c   : > { %v633_v19 = vmul.f32 %v632_v9, %v630_v0  ;;  %v640_v45 = vmul.f32 %v639_v57, %v630_v0  ;;  %v756_v16 = vadd.s32 536870912, %v755_v12  ;;  %v481_v42 = vadd.f32 1.0, %v480_v56 }
 0x10d   : > { %v492_v37 = vand.u32 3, %v491_v50  ;;  %v340_v22 = vxor.u32 2147483648, %v334_v40  ;;  %v495_v11 = vxor.u32 2147483648, %v489_v31  ;;  %v647_v13 = vand.u32 3, %v646_v28 }
 0x10e   : > { %v641_v26 = vadd.f32 -0.16666654, %v640_v45  ;;  %v634_v44 = vadd.f32 -0.4999988, %v633_v19  ;;  %v1574_v29 = vshrl.u32 %v756_v16, 30  ;;  %v343_v23 = vxor.u32 2147483648, %v326_v24 }
 0x10f   : > { %vm339_vm10 = vcmp.eq.s32.totalorder %v337_v47, 0  ;;  %v498_v10 = vxor.u32 2147483648, %v481_v42  ;;  %vm338_vm11 = vcmp.lt.s32.totalorder %v337_v47, 2  ;;  %vm494_vm12 = vcmp.eq.s32.totalorder %v492_v37, 0 }
 0x110   : > { %v642_v59 = vmul.f32 %v641_v26, %v630_v0  ;;  %v635_v35 = vmul.f32 %v634_v44, %v630_v0  ;;  %v758_v41 = vshll.u32 %v1574_v29, 30  ;;  %v341_v53 = vsel %vm339_vm10, %v326_v24, %v340_v22 }
 0x111   : > { %vm342_vm13 = vcmp.eq.s32.totalorder %v337_v47, 2  ;;  %v496_v2 = vsel %vm494_vm12, %v481_v42, %v495_v11  ;;  %vm649_vm14 = vcmp.eq.s32.totalorder %v647_v13, 0  ;;  %vm493_vm15 = vcmp.lt.s32.totalorder %v492_v37, 2 }
 0x112   : > { %v643_v43 = vadd.f32 1.0, %v642_v59  ;;  %v759_v36 = vsub.s32 %v755_v12, %v758_v41  ;;  %v636_v7 = vadd.f32 1.0, %v635_v35  ;;  %v344_v48 = vsel %vm342_vm13, %v343_v23, %v334_v40 }
 0x113   : > { %vm497_vm0 = vcmp.eq.s32.totalorder %v492_v37, 2  ;;  %v345_v57 = vsel %vm338_vm11, %v341_v53, %v344_v48  ;;  %vm652_vm1 = vcmp.eq.s32.totalorder %v647_v13, 2  ;;  %vm648_vm3 = vcmp.lt.s32.totalorder %v647_v13, 2 }
 0x114   : > { %v644_v20 = vmul.f32 %v643_v43, %v628_v38  ;;  %vm760_vm8 = vcmp.lt.s32.totalorder %v759_v36, 0  ;;  %v761_v5 = vsub.s32 0, %v759_v36  ;;  %v653_v38 = vxor.u32 2147483648, %v636_v7 }
 0x115   : > { %v499_v46 = vsel %vm497_vm0, %v498_v10, %v489_v31  ;;  %v751_v45 = vadd.s32 %v1553_v4, %v1551_v14  ;;  %vm335_vm4 = vweird.f32 %v1132_v32  ;;  %vm490_vm5 = vweird.f32 %v1135_v33 }
 0x116   : > { %v650_v63 = vxor.u32 2147483648, %v644_v20  ;;  %v762_v0 = vsel %vm760_vm8, %v761_v5, %v759_v36  ;;  %v500_v8 = vsel %vm493_vm15, %v496_v2, %v499_v46  ;;  %v654_v17 = vsel %vm652_vm1, %v653_v38, %v644_v20 }
 0x117   : > { %v763_v1 = vclz %v762_v0  ;;  %vm645_vm6 = vweird.f32 %v1138_v34  ;;  %v346_v12 = vsel %vm335_vm4, nan, %v345_v57  ;;  %v501_v15 = vsel %vm490_vm5, nan, %v500_v8 }
 0x118   : > { %v651_v9 = vsel %vm649_vm14, %v636_v7, %v650_v63  ;;  %v813_v14 = vperm.slane %v1124_v27, 0  ;;  %v814_v4 = vperm.slane %v1124_v27, 1  ;;  %v815_v32 = vperm.slane %v1124_v27, 2 }
 0x119   : > { %v918_v61 = vadd.s32 4294967294, %v763_v1  ;;  %v655_v19 = vsel %vm648_vm3, %v651_v9, %v654_v17  ;;  %vm659_vm7 = vcmp.lt.s32.totalorder %v1387_v18, 0  ;;  %vm658_vm9 = vcmp.le.f32.partialorder %v657_v58, 0.7853982 }
 0x11a   : > { %v656_v62 = vsel %vm645_vm6, nan, %v655_v19  ;;  %v821_v33 = vmul.f32 %v813_v14, %v346_v12  ;;  %v822_v44 = vmul.f32 %v814_v4, %v501_v15  ;;  %v781_v43 = vsub.s32 4, %v1574_v29 }
 0x11b   : > { %vm919_vm2 = vcmp.lt.s32.totalorder %v918_v61, 0  ;;  %v823_v59 = vmul.f32 %v815_v32, %v656_v62  ;;  %v816_v23 = vperm.slane %v1124_v27, 3  ;;  %vm800_vm12 = vweird.f32 %v1387_v18 }
 0x11c   : > { %v766_v3 = vsel %vm919_vm2, 0, %v918_v61  ;;  %825 = vst [vmem:[%s1591_s29] sm:$0xff] %v821_v33  ;;  %v782_v35 = vsel %vm659_vm7, %v781_v43, %v1574_v29 }
 0x11d   : > { %v767_v60 = vsub.s32 32, %v766_v3  ;;  %v771_v39 = vsub.s32 4294967266, %v766_v3  ;;  %v768_v52 = vshll.u32 %v759_v36, %v766_v3  ;;  %826 = vst [vmem:[%s1591_s29 + $0x8] sm:$0xff] %v822_v44  ;;  %v784_v28 = vsel %vm658_vm9, 0, %v782_v35 }
 0x11e   : > { %827 = vst [vmem:[%s1591_s29 + $0x10] sm:$0xff] %v823_v59  ;;  %v801_v42 = vadd.s32 3, %v784_v28 }
 0x11f   : > { %v769_v6 = vshrl.u32 %v751_v45, %v767_v60  ;;  %v772_v26 = vadd.s32 127, %v771_v39 }
 0x120   : > { %v802_v5 = vand.u32 3, %v801_v42 }
 0x121   : > { %v770_v51 = vor.u32 %v769_v6, %v768_v52  ;;  %v773_v49 = vshll.u32 %v772_v26, 23 }
 0x122   : > { %vm804_vm8 = vcmp.eq.s32.totalorder %v802_v5, 0  ;;  %vm807_vm10 = vcmp.eq.s32.totalorder %v802_v5, 2  ;;  %vm803_vm11 = vcmp.lt.s32.totalorder %v802_v5, 2 }
 0x123   : > { %v774_v54 = vor.u32 4788187, %v773_v49  ;;  %v777_v34 = vcvt.s32.f32 %v770_v51 }
 0x125   : > { %v775_v16 = vand.u32 2147483647, %v774_v54 }
 0x127   : > { %v778_v25 = vmul.f32 %v777_v34, %v775_v16 }
 0x129   : > { %v779_v55 = vxor.u32 2147483648, %v778_v25 }
 0x12b   : > { %v780_v30 = vsel %vm659_vm7, %v779_v55, %v778_v25 }
 0x12c   : > { %v783_v21 = vsel %vm658_vm9, %v1387_v18, %v780_v30 }
 0x12d   : > { %v785_v56 = vmul.f32 %v783_v21, %v783_v21 }
 0x12f   : > { %v786_v50 = vmul.f32 -0.001358992, %v785_v56  ;;  %v793_v40 = vmul.f32 -0.00019511016, %v785_v56 }
 0x131   : > { %v787_v41 = vadd.f32 0.041655596, %v786_v50  ;;  %v794_v31 = vadd.f32 0.008332121, %v793_v40 }
 0x133   : > { %v788_v24 = vmul.f32 %v787_v41, %v785_v56  ;;  %v795_v20 = vmul.f32 %v794_v31, %v785_v56 }
 0x135   : > { %v789_v36 = vadd.f32 -0.4999988, %v788_v24  ;;  %v796_v47 = vadd.f32 -0.16666654, %v795_v20 }
 0x137   : > { %v790_v58 = vmul.f32 %v789_v36, %v785_v56  ;;  %v797_v37 = vmul.f32 %v796_v47, %v785_v56 }
 0x139   : > { %v791_v22 = vadd.f32 1.0, %v790_v58  ;;  %v798_v7 = vadd.f32 1.0, %v797_v37 }
 0x13b   : > { %v799_v11 = vmul.f32 %v798_v7, %v783_v21  ;;  %v808_v13 = vxor.u32 2147483648, %v791_v22 }
 0x13d   : > { %v805_v29 = vxor.u32 2147483648, %v799_v11  ;;  %v809_v0 = vsel %vm807_vm10, %v808_v13, %v799_v11 }
 0x13f   : > { %v806_v63 = vsel %vm804_vm8, %v791_v22, %v805_v29 }
 0x140   : > { %v810_v10 = vsel %vm803_vm11, %v806_v63, %v809_v0 }
 0x141   : > { %v811_v1 = vsel %vm800_vm12, nan, %v810_v10 }
 0x142   : > { %v824_v53 = vmul.f32 %v816_v23, %v811_v1 }
 0x144   : > { %828 = vst [vmem:[%s1591_s29 + $0x18] sm:$0xff] %v824_v53 }
 0x145   : > { %1002 = shalt.err (!%p999_p3)
}
 0x146   : > { %926 = dma.vmem_to_hbm [thread:$0]  (%p1099_p5), %s844_s6, 512, %s846_s7, %s830_s8  }
 0x147 PF: > { %p932_p4 = scmp.ge.s32.totalorder %s1037_s12, 2  ;;  %s857_s24 = sand.u32 1, %s1025_s9  }
 0x148   : > { %s858_s25 = scalar_lea.sflag [#allocation3], %s857_s24 }
 0x149   : > { %p929_p7 = pnand %p932_p4, %p1103_p6 }
 0x14b   : > { %p930_p8 = pneg %p929_p7 }
 0x14d   : > { %1020 = dma.done.wait (%p930_p8), %s858_s25, 512  }
 0x14e   : > { %1022 = vsyncadd (%p930_p8), %s858_s25, 4294966784  ;;  %p12_p9 = scmp.ge.s32.totalorder %s1086_s15, 4   ;;  %s1650_s9 = smov %s1029_s10 }
 0x14f   : > { %s1651_s10 = smov %s1033_s11  ;;  %s1652_s11 = smov %s1097_s18 }
 0x150   : > { %s1653_s12 = smov %s1086_s15  ;;  %14 = sbr.rel (!%p12_p9) target bundleno = 3 (0x3), region = 63 }
 0x155   :  { %864 = vsyncpa [#allocation3], 1 }
 0x156   :  { %866 = vsyncpa [#allocation3 + $0x1], 1 }

</bundles_post_ra>
